<compile_context>
chip_gen: v7x
topology: tpu7x:2x2x1
jax: 0.10.0
libtpu: 0.0.40
codegen_flags: <defaults>
</compile_context>

<pallas_src>
import functools

import jax
import jax.numpy as jnp
from jax.experimental import pallas as pl
from jax.experimental.pallas import tpu as pltpu

LANE = 128


def _round_up(n, m):
    return ((n + m - 1) // m) * m


def _pad_lanes(a, axis, target):
    """Zero-pad `axis` of `a` up to `target` (lane-dense output trick)."""
    pad = target - a.shape[axis]
    if pad <= 0:
        return a
    widths = [(0, 0)] * a.ndim
    widths[axis] = (0, pad)
    return jnp.pad(a, widths)


def _linear_params(key, in_f, out_f):
    """Deterministic nn.Linear-style init: U(-1/sqrt(in), 1/sqrt(in))."""
    kw, kb = jax.random.split(key)
    bound = 1.0 / (in_f ** 0.5)
    w = jax.random.uniform(kw, (out_f, in_f), jnp.float32, -bound, bound)
    b = jax.random.uniform(kb, (out_f,), jnp.float32, -bound, bound)
    return w, b


def _opts_vector(opts, dtype):
    """JAX equivalent of tensor_from_opts (sorted keys, bool -> float)."""
    assert all(isinstance(v, bool) for v in opts.values())
    return jnp.asarray([float(opts[k]) for k in sorted(opts.keys())], dtype=dtype)


# --------------------------------------------------------------------------
# Pallas kernels (single invocation each; all operands are full VMEM blocks)
# --------------------------------------------------------------------------
def _bdot(a, b):
    """a:(S,M,K) @ b:(S,K,N) -> (S,M,N); RHS already (K,N), f32 MXU accumulate."""
    return jax.lax.dot_general(
        a, b, (((2,), (1,)), ((0,), (0,))), preferred_element_type=jnp.float32
    )


# TODO(synk): if B or S grows, restructure the separate branch as one dense
# blockdiag(x_s) @ vstack(w_s^T) matmul instead of S starved MXU pushes.
def _sep_linear_kernel(x_ref, wt_ref, b_ref, o_ref, *, mxu_dtype):
    # x:(S,B,D)  wt:(S,D,Opad)  b:(S,1,Opad)  ->  o:(S,B,Opad)
    cast = lambda a: a.astype(mxu_dtype)
    o_ref[...] = (_bdot(cast(x_ref[...]), cast(wt_ref[...]))
                  + b_ref[...]).astype(o_ref.dtype)


def _sep_mlp_kernel(x_ref, w1t_ref, b1_ref, w2t_ref, b2_ref, o_ref, *, mxu_dtype):
    # x:(S,B,D) w1t:(S,D,H) b1:(S,1,H) w2t:(S,H,Opad) b2:(S,1,Opad) -> (S,B,Opad)
    cast = lambda a: a.astype(mxu_dtype)
    h = jnp.maximum(_bdot(cast(x_ref[...]), cast(w1t_ref[...])) + b1_ref[...], 0.0)
    o_ref[...] = (_bdot(cast(h), cast(w2t_ref[...])) + b2_ref[...]).astype(o_ref.dtype)


def _shared_kernel(x_ref, w1t_ref, b1_ref, w2t_ref, b2_ref,
                   w3t_ref, b3_ref, w4t_ref, b4_ref, o_ref, *, mxu_dtype):
    # x:(SB,D) w1t:(D,H) b1:(S,H) w2t:(H,H) b2:(1,H)
    # w3t:(H,H) b3:(S,H) w4t:(H,Opad) b4:(1,Opad) -> o:(SB,Opad)
    SB = x_ref.shape[0]
    S = b1_ref.shape[0]
    B = SB // S
    cast = lambda a: a.astype(mxu_dtype)
    f32 = jnp.float32

    # Row -> step one-hot selector built in registers (float compares only),
    # so the per-step biases stay (S, H) in HBM instead of (S*B, H).
    row = jax.lax.broadcasted_iota(jnp.int32, (SB, S), 0).astype(f32)
    col = jax.lax.broadcasted_iota(jnp.int32, (SB, S), 1).astype(f32)
    lo = col * float(B)
    sel = ((row >= lo) & (row < lo + float(B))).astype(f32)      # (SB, S)
    b1 = jnp.dot(sel, b1_ref[...], preferred_element_type=f32)    # (SB, H)
    b3 = jnp.dot(sel, b3_ref[...], preferred_element_type=f32)    # (SB, H)

    h1 = jnp.maximum(jnp.dot(cast(x_ref[...]), cast(w1t_ref[...]),
                             preferred_element_type=f32) + b1, 0.0)
    h2 = jnp.maximum(jnp.dot(cast(h1), cast(w2t_ref[...]),
                             preferred_element_type=f32) + b2_ref[...], 0.0)
    h3 = jnp.maximum(jnp.dot(cast(h2), cast(w3t_ref[...]),
                             preferred_element_type=f32) + b3, 0.0)
    out = jnp.dot(cast(h3), cast(w4t_ref[...]),
                  preferred_element_type=f32) + b4_ref[...]
    o_ref[...] = out.astype(o_ref.dtype)


# --------------------------------------------------------------------------
# pallas_call wrapper: no grid, every operand a single-buffered VMEM block
# --------------------------------------------------------------------------
def _vmem_spec():
    return pl.BlockSpec(memory_space=pltpu.MemorySpace.VMEM)


def _single_call(kernel, out_shape, args):
    return pl.pallas_call(
        kernel,
        out_shape=jax.ShapeDtypeStruct(out_shape, jnp.float32),
        in_specs=[_vmem_spec() for _ in args],
        out_specs=_vmem_spec(),
    )(*args)


# --------------------------------------------------------------------------
# Module equivalent
# --------------------------------------------------------------------------
class StepwiseMLPPallas:
    def __init__(self, n_steps, width, n_out, n_opts, linear, separate,
                 input_dim=None, key=None, mxu_dtype=jnp.float32):
        if input_dim is None:
            input_dim = width
        if key is None:
            key = jax.random.PRNGKey(0)
        self.linear = linear
        self.separate = separate
        self.n_steps = n_steps
        self.n_opts = n_opts
        self.n_out = n_out
        self.mxu_dtype = mxu_dtype
        self.o_pad = _round_up(max(n_out, 1), LANE)   # lane-dense output width
        S1 = n_steps + 1

        if separate:
            if linear:
                ks = jax.random.split(key, S1)
                ws, bs = zip(*[_linear_params(k, input_dim, n_out) for k in ks])
                self.weight = jnp.stack(ws)            # (S1, n_out, in)
                self.bias = jnp.stack(bs)              # (S1, n_out)
                # kernel params: pre-transposed (K,N) layout, lane-padded once
                self.weightT_pad = jnp.transpose(
                    _pad_lanes(self.weight, 1, self.o_pad), (0, 2, 1))  # (S1,in,Opad)
                self.bias_pad = _pad_lanes(self.bias, 1, self.o_pad)[:, None, :]
            else:
                ks = jax.random.split(key, 2 * S1)
                w1s, b1s = zip(*[_linear_params(k, input_dim, input_dim * 2)
                                 for k in ks[:S1]])
                w2s, b2s = zip(*[_linear_params(k, input_dim * 2, n_out)
                                 for k in ks[S1:]])
                self.weight1 = jnp.stack(w1s)          # (S1, 2*in, in)
                self.bias1 = jnp.stack(b1s)            # (S1, 2*in)
                self.weight2 = jnp.stack(w2s)          # (S1, n_out, 2*in)
                self.bias2 = jnp.stack(b2s)            # (S1, n_out)
                self.weight1T = jnp.transpose(self.weight1, (0, 2, 1))  # (S1,in,2in)
                self.bias1_k = self.bias1[:, None, :]                   # (S1,1,2in)
                self.weight2T_pad = jnp.transpose(
                    _pad_lanes(self.weight2, 1, self.o_pad), (0, 2, 1))  # (S1,2in,Opad)
                self.bias2_pad = _pad_lanes(self.bias2, 1, self.o_pad)[:, None, :]
        else:
            k1, k2, k3, k4 = jax.random.split(key, 4)
            P = S1 + n_opts
            self.W1, self.b1 = _linear_params(k1, input_dim + P, width * 2)
            self.W2, self.b2 = _linear_params(k2, width * 2, width * 2)
            self.W3, self.b3 = _linear_params(k3, width * 2 + P, width * 2)
            self.W4, self.b4 = _linear_params(k4, width * 2, n_out)
            # exact algebra of the concat: prefix part folded into biases later
            self.W1p, W1x = self.W1[:, :P], self.W1[:, P:]
            self.W3p, W3h = self.W3[:, :P], self.W3[:, P:]
            # pre-transposed (K, N) kernel weights, output lane-padded once
            self.W1xT = W1x.T                                          # (in, H)
            self.W2T = self.W2.T                                       # (H, H)
            self.W3hT = W3h.T                                          # (H, H)
            self.W4T_pad = _pad_lanes(self.W4, 0, self.o_pad).T        # (H, Opad)
            self.b4_pad = _pad_lanes(self.b4, 0, self.o_pad)[None, :]  # (1, Opad)
            self.b2_k = self.b2[None, :]                               # (1, H)

    # ---- input preprocessing identical to the torch forward ----
    @staticmethod
    def _squeeze_to_3d(x):
        while x.ndim > 3:
            x = jnp.squeeze(x, axis=-1)
        assert x.ndim == 3
        return x

    def _prefix2d(self, Sx, dtype, opts):
        S1 = self.n_steps + 1
        one_hots = jnp.eye(S1, dtype=dtype)[:Sx]
        opts_vec = _opts_vector(opts, dtype)
        opts_t = jnp.broadcast_to(opts_vec[None, :], (Sx, opts_vec.shape[0]))
        return jnp.concatenate([one_hots, opts_t], axis=-1)   # (Sx, S1 + n_opts)

    # ---- Pallas forward ----
    def __call__(self, x, opts):
        x = self._squeeze_to_3d(x)

        if self.separate:
            S, B, D = x.shape
            if self.linear:
                kern = functools.partial(_sep_linear_kernel, mxu_dtype=self.mxu_dtype)
                out = _single_call(kern, (S, B, self.o_pad),
                                   [x, self.weightT_pad, self.bias_pad])
            else:
                kern = functools.partial(_sep_mlp_kernel, mxu_dtype=self.mxu_dtype)
                out = _single_call(kern, (S, B, self.o_pad),
                                   [x, self.weight1T, self.bias1_k,
                                    self.weight2T_pad, self.bias2_pad])
            return out[..., :self.n_out]

        # shared branch: prefix matmuls folded into per-STEP biases (S, H);
        # expansion to per-row happens inside the kernel (no (S*B,H) in HBM).
        Sx, B, D = x.shape
        prefix2d = self._prefix2d(Sx, x.dtype, opts)               # (Sx, P)
        b1_eff = prefix2d @ self.W1p.T + self.b1                   # (Sx, H)
        b3_eff = prefix2d @ self.W3p.T + self.b3                   # (Sx, H)
        x_flat = x.reshape(Sx * B, D)

        kern = functools.partial(_shared_kernel, mxu_dtype=self.mxu_dtype)
        out = _single_call(
            kern, (Sx * B, self.o_pad),
            [x_flat, self.W1xT, b1_eff, self.W2T, self.b2_k,
             self.W3hT, b3_eff, self.W4T_pad, self.b4_pad])
        return out[:, :self.n_out].reshape(Sx, B, self.n_out)

    # ---- pure-JAX reference (mirrors the torch forward line by line) ----
    def reference(self, x, opts):
        x = self._squeeze_to_3d(x)
        if self.separate:
            if self.linear:
                return jnp.einsum('sbi,soi->sbo', x, self.weight) + self.bias[:, None, :]
            h = jax.nn.relu(
                jnp.einsum('sbi,soi->sbo', x, self.weight1) + self.bias1[:, None, :]
            )
            return jnp.einsum('sbi,soi->sbo', h, self.weight2) + self.bias2[:, None, :]
        Sx, B, _ = x.shape
        S1 = self.n_steps + 1
        one_hots = jnp.broadcast_to(jnp.eye(S1, dtype=x.dtype)[:Sx, None, :], (Sx, B, S1))
        opts_vec = _opts_vector(opts, x.dtype)
        opts_t = jnp.broadcast_to(opts_vec[None, None, :], (Sx, B, opts_vec.shape[0]))
        inp = jnp.concatenate([one_hots, opts_t, x], axis=-1)
        h1 = jax.nn.relu(inp @ self.W1.T + self.b1)
        h2 = jax.nn.relu(h1 @ self.W2.T + self.b2)
        h3 = jax.nn.relu(jnp.concatenate([one_hots, opts_t, h2], -1) @ self.W3.T + self.b3)
        return h3 @ self.W4.T + self.b4


# --------------------------------------------------------------------------
# main
# --------------------------------------------------------------------------
if __name__ == "__main__":
    n_steps, width, n_out, n_opts, batch = 7, 16, 4, 3, 8
    S = n_steps + 1

    key = jax.random.PRNGKey(0)
    kx, kcfg = jax.random.split(key)
    # trailing singleton dim exercises the `x.dim() > 3` squeeze path
    x = jax.random.normal(kx, (S, batch, width, 1), dtype=jnp.float32)
    opts = {"use_a": True, "use_b": False, "use_c": True}

    cfg_keys = jax.random.split(kcfg, 3)
    configs = [(True, True), (False, True), (False, False)]  # (linear, separate)

    for (lin, sep), ck in zip(configs, cfg_keys):
        model = StepwiseMLPPallas(n_steps, width, n_out, n_opts,
                                  linear=lin, separate=sep, key=ck)
        out = jax.block_until_ready(model(x, opts))
        ref = model.reference(x, opts)
        assert out.shape == (S, batch, n_out), (lin, sep, out.shape)
        assert jnp.allclose(out, ref, atol=1e-4, rtol=1e-4), (lin, sep)

    # bf16-at-the-MXU mode (v6e/v7x recommendation): dot inputs bf16, f32 accum.
    model_bf16 = StepwiseMLPPallas(n_steps, width, n_out, n_opts,
                                   linear=False, separate=False,
                                   key=cfg_keys[2], mxu_dtype=jnp.bfloat16)
    out_bf16 = jax.block_until_ready(model_bf16(x, opts))
    ref_bf16 = model_bf16.reference(x, opts)
    assert out_bf16.shape == (S, batch, n_out)
    assert jnp.allclose(out_bf16, ref_bf16, atol=5e-2, rtol=5e-2)

    print("KERNEL_OK")
</pallas_src>

<mosaic_0001>
module attributes {stable_mosaic.version = 11 : i64} {
  func.func @_sep_linear_kernel(%arg0: memref<8x8x16xf32, #tpu.memory_space<vmem>>, %arg1: memref<8x16x128xf32, #tpu.memory_space<vmem>>, %arg2: memref<8x1x128xf32, #tpu.memory_space<vmem>>, %arg3: memref<8x8x128xf32, #tpu.memory_space<vmem>>) attributes {dimension_semantics = [], scalar_prefetch = 0 : i64, scratch_operands = 0 : i64, tpu.core_type = #tpu.core_type<tc>} {
    %c0 = arith.constant 0 : index
    %c0_0 = arith.constant 0 : index
    %c0_1 = arith.constant 0 : index
    %0 = vector.load %arg0[%c0, %c0_0, %c0_1] : memref<8x8x16xf32, #tpu.memory_space<vmem>>, vector<8x8x16xf32>
    %c0_2 = arith.constant 0 : index
    %c0_3 = arith.constant 0 : index
    %c0_4 = arith.constant 0 : index
    %1 = vector.load %arg1[%c0_2, %c0_3, %c0_4] : memref<8x16x128xf32, #tpu.memory_space<vmem>>, vector<8x16x128xf32>
    %cst = arith.constant dense<0.000000e+00> : vector<8x8x128xf32>
    %2 = tpu.matmul %0, %1, %cst {dimension_numbers = #tpu.dot_dimension_numbers<[2], [1], [1], [2], [0, 0, 0, 1, 1, 2], [0], [0]>} : vector<8x8x16xf32>, vector<8x16x128xf32>, vector<8x8x128xf32> -> vector<8x8x128xf32>
    %c0_5 = arith.constant 0 : index
    %c0_6 = arith.constant 0 : index
    %c0_7 = arith.constant 0 : index
    %3 = vector.load %arg2[%c0_5, %c0_6, %c0_7] : memref<8x1x128xf32, #tpu.memory_space<vmem>>, vector<8x1x128xf32>
    %4 = vector.broadcast %3 : vector<8x1x128xf32> to vector<8x8x128xf32>
    %5 = arith.addf %2, %4 : vector<8x8x128xf32>
    %c0_8 = arith.constant 0 : index
    %c0_9 = arith.constant 0 : index
    %c0_10 = arith.constant 0 : index
    %6 = vector.load %arg3[%c0_8, %c0_9, %c0_10] : memref<8x8x128xf32, #tpu.memory_space<vmem>>, vector<8x8x128xf32>
    tpu.vector_store %arg3[%c0_8, %c0_9, %c0_10], %5 {strides = array<i32>} : memref<8x8x128xf32, #tpu.memory_space<vmem>>, vector<8x8x128xf32>,
    return
  }
}

</mosaic_0001>

<bundles_post_ra>
// kernel: tpu_custom_call.1
= control target key start
LH: loop header
LB: loop body
LE: loop exit
PB: predicated region body
PF: predicated region fallthrough
CT: control target
= control target key end

     0   :  { %8 = vsyncpa [#allocation3], 0  ;;  %s1083_s0 = inlined_call_operand.hbm [shape: f32[8,8,16], index: 0, kind: input, shape index: {}]   ;;  %s1084_s1 = inlined_call_operand.hbm [shape: f32[8,16,128], index: 1, kind: input, shape index: {}]   ;;  %s1085_s2 = inlined_call_operand.hbm [shape: f32[8,1,128], index: 2, kind: input, shape index: {}]   ;;  %s1086_s3 = inlined_call_operand.hbm [shape: f32[8,8,128], index: 3, kind: output, shape index: {}]  }
   0x1   :  { %9 = vsyncpa [#allocation6], 0 }
   0x2   :  { %10 = vsyncpa [#allocation4], 0  ;;  %s972_s12 = smov [#allocation5]   ;;  %s973_s14 = smov [#allocation2]  }
   0x3   :  { %s28_s13 = sshll.u32 %s972_s12, 4  ;;  %s16_s15 = sshll.u32 %s973_s14, 4  ;;  %s29_s13 = int_to_ptr.vmem [resolvable:$true] %s28_s13  ;;  %s1003_s15 = int_to_ptr.vmem [resolvable:$true] %s16_s15 }
   0x4   :  { %s878_s18 = scalar_lea.hbm %s1084_s1, 2048 }
   0x5   :  { %p879_p0 = scmp.ne.s32.totalorder %s1084_s1, %s878_s18  ;;  %p882_p1 = scmp.lt.u32.totalorder %s878_s18, %s1084_s1 }
   0x7   :  { %p884_p2 = pnand %p882_p1, %p879_p0 }
   0x9   :  { %887 = shalt.err (!%p884_p2)
}
   0xa   :  { %s888_s23 = scalar_lea.vmem %s29_s13, 2048  ;;  %p893_p4 = scmp.lt.s32.totalorder %s29_s13, %s29_s13 }
   0xb   :  { %p889_p3 = scmp.ne.s32.totalorder %s29_s13, %s888_s23  ;;  %p894_p5 = scmp.lt.s32.totalorder %s888_s23, %s888_s23 }
   0xd   :  { %p895_p6 = por %p894_p5, %p893_p4 }
   0xf   :  { %p896_p7 = pnand %p895_p6, %p889_p3 }
  0x11   :  { %899 = shalt.err (!%p896_p7)
}
  0x12   :  { %s974_s24 = smov 128   ;;  %s975_s25 = smov 8  }
  0x13   :  { %34 = dma.hbm_to_vmem [thread:$0]  %s1084_s1, 2048, %s29_s13, [#allocation6], %s974_s24, %s974_s24, %s975_s25  }
  0x14   :  { %s900_s30 = scalar_lea.hbm %s1083_s0, 1024 }
  0x15   :  { %p901_p8 = scmp.ne.s32.totalorder %s1083_s0, %s900_s30  ;;  %p904_p9 = scmp.lt.u32.totalorder %s900_s30, %s1083_s0 }
  0x17   :  { %p906_p10 = pnand %p904_p9, %p901_p8 }
  0x19   :  { %909 = shalt.err (!%p906_p10)
}
  0x1a   :  { %s910_s8 = scalar_lea.vmem %s1003_s15, 1024  ;;  %p915_p12 = scmp.lt.s32.totalorder %s1003_s15, %s1003_s15 }
  0x1b   :  { %p911_p11 = scmp.ne.s32.totalorder %s1003_s15, %s910_s8  ;;  %p916_p13 = scmp.lt.s32.totalorder %s910_s8, %s910_s8 }
  0x1d   :  { %p917_p0 = por %p916_p13, %p915_p12 }
  0x1f   :  { %p918_p1 = pnand %p917_p0, %p911_p11 }
  0x21   :  { %921 = shalt.err (!%p918_p1)
}
  0x22   :  { %22 = dma.hbm_to_vmem [thread:$0]  %s1083_s0, 1024, %s1003_s15, [#allocation3], %s974_s24, %s974_s24, %s975_s25  }
  0x23   :  { %s976_s10 = smov [#allocation7]   ;;  %s922_s14 = scalar_lea.hbm %s1085_s2, 128 }
  0x24   :  { %s40_s11 = sshll.u32 %s976_s10, 4  ;;  %p923_p2 = scmp.ne.s32.totalorder %s1085_s2, %s922_s14  ;;  %s41_s11 = int_to_ptr.vmem [resolvable:$true] %s40_s11 }
  0x25   :  { %p926_p3 = scmp.lt.u32.totalorder %s922_s14, %s1085_s2 }
  0x27   :  { %p928_p4 = pnand %p926_p3, %p923_p2 }
  0x29   :  { %931 = shalt.err (!%p928_p4)
}
  0x2a   :  { %s932_s20 = scalar_lea.vmem %s41_s11, 128  ;;  %p937_p6 = scmp.lt.s32.totalorder %s41_s11, %s41_s11 }
  0x2b   :  { %p933_p5 = scmp.ne.s32.totalorder %s41_s11, %s932_s20  ;;  %p938_p7 = scmp.lt.s32.totalorder %s932_s20, %s932_s20 }
  0x2d   :  { %p939_p8 = por %p938_p7, %p937_p6 }
  0x2f   :  { %p940_p9 = pnand %p939_p8, %p933_p5 }
  0x31   :  { %943 = shalt.err (!%p940_p9)
}
  0x32   :  { %s977_s0 = smov 16   ;;  %s978_s15 = smov 1  }
  0x33   :  { %46 = dma.hbm_to_vmem [thread:$0]  %s1085_s2, 128, %s41_s11, [#allocation6], %s977_s0, %s977_s0, %s978_s15  }
  0x34   :  { %966 = dma.done.wait [#allocation3], 1024  }
  0x35   :  { %967 = vsyncadd [#allocation3], 4294966272 }
  0x36   :  { %968 = dma.done.wait [#allocation6], 2176  }
  0x37   :  { %969 = vsyncadd [#allocation6], 4294965120  ;;  %v979_v0 = vmov 0.0|0.0   ;;  %vm980_vm0 = vmmov 0   ;;  %v981_v1 = vmov 0.0   ;;  %v64_v2 = vld [vmem:[#allocation5] sm:$0xff] }
  0x38   :  { %843 = vmatprep.subr.bf16.mxu0 %v979_v0  ;;  %846 = vmatprep.subr.bf16.mxu1 %v979_v0  ;;  %v65_v3 = vld [vmem:[#allocation5 + $0x8] sm:$0xff]  ;;  %v66_v4 = vld [vmem:[#allocation5 + $0x10] sm:$0xff]  ;;  %v67_v6 = vld [vmem:[#allocation5 + $0x18] sm:$0xff]  ;;  %vm136_vm1 = vcmask 130048   ;;  %s982_s2 = smov [#allocation8]  }
  0x39   :  { %791 = vmatprep.mubr.msk.f32.mxu0 %vm980_vm0, %v981_v1  ;;  %798 = vmatprep.mubr.msk.f32.mxu1 %vm980_vm0, %v981_v1  ;;  %v844_v5 = vpack.c.bf16 %v65_v3, %v64_v2  ;;  %v847_v7 = vpack.c.bf16 %v67_v6, %v66_v4  ;;  %v68_v8 = vld [vmem:[#allocation5 + $0x20] sm:$0xff]  ;;  %v69_v9 = vld [vmem:[#allocation5 + $0x28] sm:$0xff]  ;;  %v70_v10 = vld [vmem:[#allocation5 + $0x30] sm:$0xff]  ;;  %s734_s23 = sshll.u32 %s982_s2, 4  ;;  %s735_s23 = int_to_ptr.vmem [resolvable:$true] %s734_s23 }
  0x3a   :  { %v56_v11 = vld [vmem:[#allocation2] sm:$0xff]  ;;  %v850_v12 = vpack.c.bf16 %v69_v9, %v68_v8  ;;  %v71_v13 = vld [vmem:[#allocation5 + $0x38] sm:$0xff]  ;;  %v57_v14 = vld [vmem:[#allocation2 + $0x8] sm:$0xff]  ;;  %s944_s26 = scalar_lea.vmem %s735_s23, 1024  ;;  %p949_p11 = scmp.lt.s32.totalorder %s735_s23, %s735_s23 }
  0x3b   :  { %845 = vmatpush3.bf16.msra.mxu0 %v844_v5  ;;  %848 = vmatpush3.bf16.msra.mxu1 %v847_v7  ;;  %v853_v15 = vpack.c.bf16 %v71_v13, %v70_v10  ;;  %v72_v16 = vld [vmem:[#allocation5 + $0x40] sm:$0xff]  ;;  %v73_v17 = vld [vmem:[#allocation5 + $0x48] sm:$0xff]  ;;  %v74_v18 = vld [vmem:[#allocation5 + $0x50] sm:$0xff]  ;;  %p945_p10 = scmp.ne.s32.totalorder %s735_s23, %s944_s26  ;;  %p950_p12 = scmp.lt.s32.totalorder %s944_s26, %s944_s26 }
  0x3c   :  { %849 = vmatprep.subr.bf16.mxu0 %v979_v0  ;;  %852 = vmatprep.subr.bf16.mxu1 %v979_v0  ;;  %v75_v19 = vld [vmem:[#allocation5 + $0x58] sm:$0xff]  ;;  %v58_v20 = vld [vmem:[#allocation2 + $0x10] sm:$0xff]  ;;  %v856_v21 = vpack.c.bf16 %v73_v17, %v72_v16  ;;  %v76_v24 = vld [vmem:[#allocation5 + $0x60] sm:$0xff] }
  0x3d   :  { %v59_v22 = vld [vmem:[#allocation2 + $0x18] sm:$0xff]  ;;  %v859_v23 = vpack.c.bf16 %v75_v19, %v74_v18  ;;  %v77_v25 = vld [vmem:[#allocation5 + $0x68] sm:$0xff]  ;;  %v78_v26 = vld [vmem:[#allocation5 + $0x70] sm:$0xff]  ;;  %p951_p13 = por %p950_p12, %p949_p11 }
  0x3e   :  { %792 = vmatmul.mubr.msk.f32.vlgmr.msra.gmra.mrb[0].mxu0 %vm136_vm1, %v56_v11  ;;  %799 = vmatmul.mubr.msk.f32.vlgmr.msra.gmra.mrb[0].mxu1 %vm136_vm1, %v57_v14  ;;  %v79_v27 = vld [vmem:[#allocation5 + $0x78] sm:$0xff]  ;;  %v60_v28 = vld [vmem:[#allocation2 + $0x20] sm:$0xff]  ;;  %v862_v29 = vpack.c.bf16 %v77_v25, %v76_v24  ;;  %v61_v30 = vld [vmem:[#allocation2 + $0x28] sm:$0xff] }
  0x3f   :  { %851 = vmatpush3.bf16.msra.mxu0 %v850_v12  ;;  %854 = vmatpush3.bf16.msra.mxu1 %v853_v15  ;;  %v865_v31 = vpack.c.bf16 %v79_v27, %v78_v26  ;;  %v62_v32 = vld [vmem:[#allocation2 + $0x30] sm:$0xff]  ;;  %v63_v33 = vld [vmem:[#allocation2 + $0x38] sm:$0xff]  ;;  %v747_v34 = vld [vmem:[#allocation7] ss:$0 sm:$0xff]  ;;  %p952_p0 = pnand %p951_p13, %p945_p10 }
  0x40   :  { %805 = vmatprep.mubr.msk.f32.mxu0 %vm980_vm0, %v981_v1  ;;  %812 = vmatprep.mubr.msk.f32.mxu1 %vm980_vm0, %v981_v1  ;;  %v748_v35 = vld [vmem:[#allocation7 + $0x1] ss:$0 sm:$0xff]  ;;  %v749_v42 = vld [vmem:[#allocation7 + $0x2] ss:$0 sm:$0xff]  ;;  %v750_v43 = vld [vmem:[#allocation7 + $0x3] ss:$0 sm:$0xff] }
  0x41   :  { %855 = vmatprep.subr.bf16.mxu0 %v979_v0  ;;  %858 = vmatprep.subr.bf16.mxu1 %v979_v0  ;;  %v751_v50 = vld [vmem:[#allocation7 + $0x4] ss:$0 sm:$0xff]  ;;  %v752_v51 = vld [vmem:[#allocation7 + $0x5] ss:$0 sm:$0xff]  ;;  %v753_v58 = vld [vmem:[#allocation7 + $0x6] ss:$0 sm:$0xff] }
  0x42   :  { %806 = vmatmul.mubr.msk.f32.vlgmr.msra.gmra.mrb[2].mxu0 %vm136_vm1, %v58_v20  ;;  %813 = vmatmul.mubr.msk.f32.vlgmr.msra.gmra.mrb[2].mxu1 %vm136_vm1, %v59_v22  ;;  %v754_v59 = vld [vmem:[#allocation7 + $0x7] ss:$0 sm:$0xff] }
  0x43   :  { %857 = vmatpush3.bf16.msra.mxu0 %v856_v21  ;;  %860 = vmatpush3.bf16.msra.mxu1 %v859_v23 }
  0x44   :  { %819 = vmatprep.mubr.msk.f32.mxu0 %vm980_vm0, %v981_v1  ;;  %826 = vmatprep.mubr.msk.f32.mxu1 %vm980_vm0, %v981_v1 }
  0x45   :  { %861 = vmatprep.subr.bf16.mxu0 %v979_v0  ;;  %864 = vmatprep.subr.bf16.mxu1 %v979_v0 }
  0x46   :  { %820 = vmatmul.mubr.msk.f32.vlgmr.msra.gmra.mrb[4].mxu0 %vm136_vm1, %v60_v28  ;;  %827 = vmatmul.mubr.msk.f32.vlgmr.msra.gmra.mrb[4].mxu1 %vm136_vm1, %v61_v30 }
  0x47   :  { %863 = vmatpush3.bf16.msra.mxu0 %v862_v29  ;;  %866 = vmatpush3.bf16.msra.mxu1 %v865_v31 }
  0x48   :  { %833 = vmatprep.mubr.msk.f32.mxu0 %vm980_vm0, %v981_v1  ;;  %840 = vmatprep.mubr.msk.f32.mxu1 %vm980_vm0, %v981_v1 }
  0x4a   :  { %834 = vmatmul.mubr.msk.f32.vlgmr.msra.gmra.mrb[6].mxu0 %vm136_vm1, %v62_v32  ;;  %841 = vmatmul.mubr.msk.f32.vlgmr.msra.gmra.mrb[6].mxu1 %vm136_vm1, %v63_v33 }
 0x111   :  { %v206_v36 = vpop.f32.mrb[0].mxu0  ;;  %v279_v38 = vpop.f32.mrb[0].mxu1 }
 0x112   :  { %v207_v37 = vadd.f32 %v747_v34, %v206_v36  ;;  %v793_v39 = vpop.f32.mrb[1].mxu0  ;;  %v280_v40 = vadd.f32 %v748_v35, %v279_v38  ;;  %v800_v41 = vpop.f32.mrb[1].mxu1 }
 0x114   :  { %721 = vst [vmem:[#allocation8] sm:$0xff] %v207_v37  ;;  %722 = vst [vmem:[#allocation8 + $0x8] sm:$0xff] %v280_v40 }
 0x115   :  { %v352_v44 = vpop.f32.mrb[2].mxu0  ;;  %v425_v46 = vpop.f32.mrb[2].mxu1 }
 0x116   :  { %v353_v45 = vadd.f32 %v749_v42, %v352_v44  ;;  %v807_v47 = vpop.f32.mrb[3].mxu0  ;;  %v426_v48 = vadd.f32 %v750_v43, %v425_v46  ;;  %v814_v49 = vpop.f32.mrb[3].mxu1 }
 0x118   :  { %723 = vst [vmem:[#allocation8 + $0x10] sm:$0xff] %v353_v45  ;;  %724 = vst [vmem:[#allocation8 + $0x18] sm:$0xff] %v426_v48 }
 0x119   :  { %v498_v52 = vpop.f32.mrb[4].mxu0  ;;  %v571_v54 = vpop.f32.mrb[4].mxu1 }
 0x11a   :  { %v499_v53 = vadd.f32 %v751_v50, %v498_v52  ;;  %v821_v55 = vpop.f32.mrb[5].mxu0  ;;  %v572_v56 = vadd.f32 %v752_v51, %v571_v54  ;;  %v828_v57 = vpop.f32.mrb[5].mxu1 }
 0x11c   :  { %725 = vst [vmem:[#allocation8 + $0x20] sm:$0xff] %v499_v53  ;;  %726 = vst [vmem:[#allocation8 + $0x28] sm:$0xff] %v572_v56 }
 0x11d   :  { %v644_v60 = vpop.f32.mrb[6].mxu0  ;;  %v717_v62 = vpop.f32.mrb[6].mxu1 }
 0x11e   :  { %v645_v61 = vadd.f32 %v753_v58, %v644_v60  ;;  %v835_v63 = vpop.f32.mrb[7].mxu0  ;;  %v718_v0 = vadd.f32 %v754_v59, %v717_v62  ;;  %v842_v1 = vpop.f32.mrb[7].mxu1 }
 0x120   :  { %727 = vst [vmem:[#allocation8 + $0x30] sm:$0xff] %v645_v61  ;;  %728 = vst [vmem:[#allocation8 + $0x38] sm:$0xff] %v718_v0 }
 0x121   :  { %955 = shalt.err (!%p952_p0)
}
 0x122   :  { %s956_s29 = scalar_lea.hbm %s1086_s3, 1024 }
 0x123   :  { %p957_p1 = scmp.ne.s32.totalorder %s1086_s3, %s956_s29  ;;  %p960_p2 = scmp.lt.u32.totalorder %s956_s29, %s1086_s3 }
 0x125   :  { %p962_p3 = pnand %p960_p2, %p957_p1 }
 0x127   :  { %965 = shalt.err (!%p962_p3)
}
 0x128   :  { %740 = dma.vmem_to_hbm [thread:$0]  %s735_s23, 1024, %s1086_s3, [#allocation4], %s974_s24, %s974_s24, %s975_s25  }
 0x129   :  { %970 = dma.done.wait [#allocation4], 1024  }
 0x12a   :  { %971 = vsyncadd [#allocation4], 4294966272 }
 0x12b   :  { %744 = vsyncpa [#allocation3], 1 }
 0x12c   :  { %745 = vsyncpa [#allocation6], 1 }
 0x12d   :  { %746 = vsyncpa [#allocation4], 1 }

</bundles_post_ra>
